<compile_context>
chip_gen: v7x
topology: tpu7x:2x2x1
jax: 0.10.0
libtpu: 0.0.40
codegen_flags: <defaults>
</compile_context>

<pallas_src>
import functools

import jax
import jax.numpy as jnp
from jax import lax
from jax.experimental import pallas as pl
from jax.experimental.pallas import tpu as pltpu

_LANE = 128


def _round_up(x, m):
    return ((x + m - 1) // m) * m


def _hist_kernel(pred_ref, target_ref, counts_ref, errsum_ref, *,
                 num_bins, n_valid, ragged):
    """Per-block bin histogram.

    counts_ref / errsum_ref: (num_bins, 128) lane-wise partial sums over the
    rows of this block (cross-lane reduction deferred to the epilogue).
    """
    step = pl.program_id(0)
    tile_rows = pred_ref.shape[0]

    pred = pred_ref[...]
    target = target_ref[...]
    sq_err = (pred - target) ** 2

    # Bin assignment — divide kept so edge behaviour is bit-identical to
    # torch.floor(target / bin_width).
    bin_width = 1.0 / num_bins
    bins = jnp.floor(target / bin_width).astype(jnp.int32)
    bins = jnp.clip(bins, 0, num_bins - 1)

    if ragged:
        # Only emitted when some block can contain padded / out-of-bounds
        # elements; they are routed to sentinel bin `num_bins`, which matches
        # no real bin -> contribute to neither counts nor error sums.
        base = step * (tile_rows * _LANE)
        elem_idx = (base
                    + lax.broadcasted_iota(jnp.int32, (tile_rows, _LANE), 0) * _LANE
                    + lax.broadcasted_iota(jnp.int32, (tile_rows, _LANE), 1))
        bins = jnp.where(elem_idx < n_valid, bins, num_bins)

    # Unrolled per-bin loop on 2-D masks: no (num_bins, tile_rows, 128)
    # broadcast is ever formed.  The axis-0 (sublane) reduce is a chain of
    # vreg adds plus one XLU reduce per bin; cross-lane reduce is deferred.
    for b in range(num_bins):
        match = bins == b
        cnt = jnp.sum(match.astype(jnp.float32), axis=0, keepdims=True)      # (1, 128)
        # select (NOT multiply) so garbage NaN/Inf in padded/OOB lanes of
        # sq_err can never leak into the sum.
        err = jnp.sum(jnp.where(match, sq_err, 0.0), axis=0, keepdims=True)  # (1, 128)
        counts_ref[b:b + 1, :] = cnt
        errsum_ref[b:b + 1, :] = err


def dynamic_weighted_mse_loss(pred, target, num_bins=20, beta=0.9,
                              min_weight=1.0, max_tile_rows=2048):
    """Pallas TPU forward of DynamicWeightedMSELoss.  Returns a scalar f32."""
    assert pred.shape == target.shape
    n = int(pred.size)
    assert n > 0

    p = pred.reshape(-1).astype(jnp.float32)
    t = target.reshape(-1).astype(jnp.float32)

    # Pad (at most 127 elements) only up to a whole 128-lane row.  The former
    # full pad to a tile multiple — and its extra HBM copy — is gone; the
    # ragged final block is handled by the in-kernel element-index mask.
    n128 = _round_up(n, _LANE)
    if n128 != n:
        p = jnp.pad(p, (0, n128 - n))
        t = jnp.pad(t, (0, n128 - n))
    rows = n128 // _LANE
    p2 = p.reshape(rows, _LANE)
    t2 = t.reshape(rows, _LANE)

    if rows <= max_tile_rows:
        tile_rows = rows                              # single block == full dim
    else:
        tile_rows = max(8, (max_tile_rows // 8) * 8)  # (8,128)-aligned tile
    num_blocks = pl.cdiv(rows, tile_rows)
    # Masking is statically elided when the grid tiles the data exactly.
    ragged = (num_blocks * tile_rows * _LANE) != n

    kernel = functools.partial(_hist_kernel, num_bins=num_bins,
                               n_valid=n, ragged=ragged)

    counts_parts, errsum_parts = pl.pallas_call(
        kernel,
        grid=(num_blocks,),
        in_specs=[
            pl.BlockSpec((tile_rows, _LANE), lambda i: (i, 0)),
            pl.BlockSpec((tile_rows, _LANE), lambda i: (i, 0)),
        ],
        out_specs=[
            pl.BlockSpec((None, num_bins, _LANE), lambda i: (i, 0, 0)),
            pl.BlockSpec((None, num_bins, _LANE), lambda i: (i, 0, 0)),
        ],
        out_shape=[
            jax.ShapeDtypeStruct((num_blocks, num_bins, _LANE), jnp.float32),
            jax.ShapeDtypeStruct((num_blocks, num_bins, _LANE), jnp.float32),
        ],
        compiler_params=pltpu.CompilerParams(
            # 'parallel': independent per-block partials -> v7x can split the
            # row range across its two TensorCores (no-op on v5e/v6e).
            dimension_semantics=("parallel",),
            vmem_limit_bytes=32 * 1024 * 1024),
    )(p2, t2)

    # Tiny epilogue (num_bins elements): weight math + final mean, outside the
    # streaming kernel so the grid axis can stay 'parallel' without racing on
    # a shared scalar.
    counts = jnp.sum(counts_parts, axis=(0, 2))      # (num_bins,)
    errsum = jnp.sum(errsum_parts, axis=(0, 2))      # (num_bins,)
    counts = jnp.maximum(counts, 1.0)
    w = counts ** jnp.float32(-beta)
    tot = jnp.sum(w)
    w = jnp.where(tot > 0.0, w / tot * num_bins, w)
    w = jnp.maximum(w, jnp.float32(min_weight))
    return jnp.sum(w * errsum) / jnp.float32(n)


def _reference(pred, target, num_bins=20, beta=0.9, min_weight=1.0):
    """Pure-JAX reference mirroring the PyTorch module, for validation."""
    pred = pred.astype(jnp.float32).reshape(-1)
    target = target.astype(jnp.float32).reshape(-1)
    sq_err = (pred - target) ** 2
    bin_width = 1.0 / num_bins
    bins = jnp.clip(jnp.floor(target / bin_width).astype(jnp.int32),
                    0, num_bins - 1)
    counts = jnp.array(
        [jnp.sum((bins == i).astype(jnp.float32)) for i in range(num_bins)])
    counts = jnp.maximum(counts, 1.0)
    w = counts ** (-beta)
    w = jnp.where(jnp.sum(w) > 0, w / jnp.sum(w) * num_bins, w)
    w = jnp.maximum(w, min_weight)
    return jnp.mean(w[bins] * sq_err)


if __name__ == "__main__":
    key = jax.random.PRNGKey(0)
    k1, k2, k3, k4, k5, k6 = jax.random.split(key, 6)

    # Case 1: typical "2label" regression batch (preds/targets in [0,1]):
    # n = 256 -> single block, no padding, mask statically elided.
    pred = jax.random.uniform(k1, (128, 2), dtype=jnp.float32)
    target = jax.random.uniform(k2, (128, 2), dtype=jnp.float32)
    loss = jax.block_until_ready(dynamic_weighted_mse_loss(pred, target))
    ref = jax.block_until_ready(_reference(pred, target))
    assert jnp.allclose(loss, ref, rtol=1e-5, atol=1e-6), (loss, ref)

    # Case 2: n not a multiple of 128 + multi-block ragged grid
    # (128-lane pad, overhanging final block, element-index masking).
    pred_b = jax.random.uniform(k3, (600, 2), dtype=jnp.float32)
    target_b = jax.random.uniform(k4, (600, 2), dtype=jnp.float32)
    loss_b = jax.block_until_ready(
        dynamic_weighted_mse_loss(pred_b, target_b, max_tile_rows=8))
    ref_b = jax.block_until_ready(_reference(pred_b, target_b))
    assert jnp.allclose(loss_b, ref_b, rtol=1e-5, atol=1e-6), (loss_b, ref_b)

    # Case 3: multi-block grid that tiles evenly ('parallel' axis with
    # per-block partial outputs, masking statically skipped).
    pred_c = jax.random.uniform(k5, (1024, 2), dtype=jnp.float32)
    target_c = jax.random.uniform(k6, (1024, 2), dtype=jnp.float32)
    loss_c = jax.block_until_ready(
        dynamic_weighted_mse_loss(pred_c, target_c, max_tile_rows=8))
    ref_c = jax.block_until_ready(_reference(pred_c, target_c))
    assert jnp.allclose(loss_c, ref_c, rtol=1e-5, atol=1e-6), (loss_c, ref_c)

    print("KERNEL_OK")
</pallas_src>

<mosaic_0001>
module attributes {stable_mosaic.version = 11 : i64} {
  func.func @_hist_kernel(%arg0: i32, %arg1: memref<2x128xf32, #tpu.memory_space<vmem>>, %arg2: memref<2x128xf32, #tpu.memory_space<vmem>>, %arg3: memref<1x20x128xf32, #tpu.memory_space<vmem>>, %arg4: memref<1x20x128xf32, #tpu.memory_space<vmem>>) attributes {dimension_semantics = [#tpu.dimension_semantics<parallel>], iteration_bounds = array<i64: 1>, scalar_prefetch = 0 : i64, scratch_operands = 0 : i64, tpu.core_type = #tpu.core_type<tc>, window_params = [{transform_indices = @transform_0, window_bounds = array<i64: 2, 128>}, {transform_indices = @transform_1, window_bounds = array<i64: 2, 128>}, {transform_indices = @transform_2, window_bounds = array<i64: 1, 20, 128>}, {transform_indices = @transform_3, window_bounds = array<i64: 1, 20, 128>}]} {
    %c0 = arith.constant 0 : index
    %c0_0 = arith.constant 0 : index
    %0 = vector.load %arg1[%c0, %c0_0] : memref<2x128xf32, #tpu.memory_space<vmem>>, vector<2x128xf32>
    %c0_1 = arith.constant 0 : index
    %c0_2 = arith.constant 0 : index
    %1 = vector.load %arg2[%c0_1, %c0_2] : memref<2x128xf32, #tpu.memory_space<vmem>>, vector<2x128xf32>
    %2 = arith.subf %0, %1 : vector<2x128xf32>
    %3 = arith.mulf %2, %2 : vector<2x128xf32>
    %cst = arith.constant 5.000000e-02 : f32
    %4 = vector.broadcast %cst : f32 to vector<2x128xf32>
    %5 = arith.divf %1, %4 : vector<2x128xf32>
    %6 = math.floor %5 : vector<2x128xf32>
    %7 = arith.fptosi %6 : vector<2x128xf32> to vector<2x128xi32>
    %c0_i32 = arith.constant 0 : i32
    %c19_i32 = arith.constant 19 : i32
    %8 = vector.broadcast %c0_i32 : i32 to vector<2x128xi32>
    %9 = arith.maxsi %8, %7 : vector<2x128xi32>
    %10 = vector.broadcast %c19_i32 : i32 to vector<2x128xi32>
    %11 = arith.minsi %10, %9 : vector<2x128xi32>
    %c0_i32_3 = arith.constant 0 : i32
    %12 = vector.broadcast %c0_i32_3 : i32 to vector<2x128xi32>
    %13 = arith.cmpi eq, %11, %12 : vector<2x128xi32>
    %14 = arith.extui %13 : vector<2x128xi1> to vector<2x128xi32>
    %15 = arith.sitofp %14 : vector<2x128xi32> to vector<2x128xf32>
    %cst_4 = arith.constant dense<0.000000e+00> : vector<128xf32>
    %16 = vector.multi_reduction <add>, %15, %cst_4 [0] : vector<2x128xf32> to vector<128xf32>
    %17 = vector.shape_cast %16 : vector<128xf32> to vector<1x128xf32>
    %cst_5 = arith.constant 0.000000e+00 : f32
    %18 = vector.broadcast %cst_5 : f32 to vector<2x128xf32>
    %19 = arith.select %13, %3, %18 : vector<2x128xi1>, vector<2x128xf32>
    %cst_6 = arith.constant dense<0.000000e+00> : vector<128xf32>
    %20 = vector.multi_reduction <add>, %19, %cst_6 [0] : vector<2x128xf32> to vector<128xf32>
    %21 = vector.shape_cast %20 : vector<128xf32> to vector<1x128xf32>
    %c0_7 = arith.constant 0 : index
    %c0_8 = arith.constant 0 : index
    %c0_9 = arith.constant 0 : index
    %22 = vector.load %arg3[%c0_7, %c0_8, %c0_9] : memref<1x20x128xf32, #tpu.memory_space<vmem>>, vector<1x1x128xf32>
    %23 = vector.shape_cast %22 : vector<1x1x128xf32> to vector<1x128xf32>
    %24 = vector.shape_cast %17 : vector<1x128xf32> to vector<1x1x128xf32>
    tpu.vector_store %arg3[%c0_7, %c0_8, %c0_9], %24 {strides = array<i32>} : memref<1x20x128xf32, #tpu.memory_space<vmem>>, vector<1x1x128xf32>,
    %c0_10 = arith.constant 0 : index
    %c0_11 = arith.constant 0 : index
    %c0_12 = arith.constant 0 : index
    %25 = vector.load %arg4[%c0_10, %c0_11, %c0_12] : memref<1x20x128xf32, #tpu.memory_space<vmem>>, vector<1x1x128xf32>
    %26 = vector.shape_cast %25 : vector<1x1x128xf32> to vector<1x128xf32>
    %27 = vector.shape_cast %21 : vector<1x128xf32> to vector<1x1x128xf32>
    tpu.vector_store %arg4[%c0_10, %c0_11, %c0_12], %27 {strides = array<i32>} : memref<1x20x128xf32, #tpu.memory_space<vmem>>, vector<1x1x128xf32>,
    %c1_i32 = arith.constant 1 : i32
    %28 = vector.broadcast %c1_i32 : i32 to vector<2x128xi32>
    %29 = arith.cmpi eq, %11, %28 : vector<2x128xi32>
    %30 = arith.extui %29 : vector<2x128xi1> to vector<2x128xi32>
    %31 = arith.sitofp %30 : vector<2x128xi32> to vector<2x128xf32>
    %cst_13 = arith.constant dense<0.000000e+00> : vector<128xf32>
    %32 = vector.multi_reduction <add>, %31, %cst_13 [0] : vector<2x128xf32> to vector<128xf32>
    %33 = vector.shape_cast %32 : vector<128xf32> to vector<1x128xf32>
    %cst_14 = arith.constant 0.000000e+00 : f32
    %34 = vector.broadcast %cst_14 : f32 to vector<2x128xf32>
    %35 = arith.select %29, %3, %34 : vector<2x128xi1>, vector<2x128xf32>
    %cst_15 = arith.constant dense<0.000000e+00> : vector<128xf32>
    %36 = vector.multi_reduction <add>, %35, %cst_15 [0] : vector<2x128xf32> to vector<128xf32>
    %37 = vector.shape_cast %36 : vector<128xf32> to vector<1x128xf32>
    %c0_16 = arith.constant 0 : index
    %c1 = arith.constant 1 : index
    %c0_17 = arith.constant 0 : index
    %38 = vector.load %arg3[%c0_16, %c1, %c0_17] : memref<1x20x128xf32, #tpu.memory_space<vmem>>, vector<1x1x128xf32>
    %39 = vector.shape_cast %38 : vector<1x1x128xf32> to vector<1x128xf32>
    %40 = vector.shape_cast %33 : vector<1x128xf32> to vector<1x1x128xf32>
    tpu.vector_store %arg3[%c0_16, %c1, %c0_17], %40 {strides = array<i32>} : memref<1x20x128xf32, #tpu.memory_space<vmem>>, vector<1x1x128xf32>,
    %c0_18 = arith.constant 0 : index
    %c1_19 = arith.constant 1 : index
    %c0_20 = arith.constant 0 : index
    %41 = vector.load %arg4[%c0_18, %c1_19, %c0_20] : memref<1x20x128xf32, #tpu.memory_space<vmem>>, vector<1x1x128xf32>
    %42 = vector.shape_cast %41 : vector<1x1x128xf32> to vector<1x128xf32>
    %43 = vector.shape_cast %37 : vector<1x128xf32> to vector<1x1x128xf32>
    tpu.vector_store %arg4[%c0_18, %c1_19, %c0_20], %43 {strides = array<i32>} : memref<1x20x128xf32, #tpu.memory_space<vmem>>, vector<1x1x128xf32>,
    %c2_i32 = arith.constant 2 : i32
    %44 = vector.broadcast %c2_i32 : i32 to vector<2x128xi32>
    %45 = arith.cmpi eq, %11, %44 : vector<2x128xi32>
    %46 = arith.extui %45 : vector<2x128xi1> to vector<2x128xi32>
    %47 = arith.sitofp %46 : vector<2x128xi32> to vector<2x128xf32>
    %cst_21 = arith.constant dense<0.000000e+00> : vector<128xf32>
    %48 = vector.multi_reduction <add>, %47, %cst_21 [0] : vector<2x128xf32> to vector<128xf32>
    %49 = vector.shape_cast %48 : vector<128xf32> to vector<1x128xf32>
    %cst_22 = arith.constant 0.000000e+00 : f32
    %50 = vector.broadcast %cst_22 : f32 to vector<2x128xf32>
    %51 = arith.select %45, %3, %50 : vector<2x128xi1>, vector<2x128xf32>
    %cst_23 = arith.constant dense<0.000000e+00> : vector<128xf32>
    %52 = vector.multi_reduction <add>, %51, %cst_23 [0] : vector<2x128xf32> to vector<128xf32>
    %53 = vector.shape_cast %52 : vector<128xf32> to vector<1x128xf32>
    %c0_24 = arith.constant 0 : index
    %c2 = arith.constant 2 : index
    %c0_25 = arith.constant 0 : index
    %54 = vector.load %arg3[%c0_24, %c2, %c0_25] : memref<1x20x128xf32, #tpu.memory_space<vmem>>, vector<1x1x128xf32>
    %55 = vector.shape_cast %54 : vector<1x1x128xf32> to vector<1x128xf32>
    %56 = vector.shape_cast %49 : vector<1x128xf32> to vector<1x1x128xf32>
    tpu.vector_store %arg3[%c0_24, %c2, %c0_25], %56 {strides = array<i32>} : memref<1x20x128xf32, #tpu.memory_space<vmem>>, vector<1x1x128xf32>,
    %c0_26 = arith.constant 0 : index
    %c2_27 = arith.constant 2 : index
    %c0_28 = arith.constant 0 : index
    %57 = vector.load %arg4[%c0_26, %c2_27, %c0_28] : memref<1x20x128xf32, #tpu.memory_space<vmem>>, vector<1x1x128xf32>
    %58 = vector.shape_cast %57 : vector<1x1x128xf32> to vector<1x128xf32>
    %59 = vector.shape_cast %53 : vector<1x128xf32> to vector<1x1x128xf32>
    tpu.vector_store %arg4[%c0_26, %c2_27, %c0_28], %59 {strides = array<i32>} : memref<1x20x128xf32, #tpu.memory_space<vmem>>, vector<1x1x128xf32>,
    %c3_i32 = arith.constant 3 : i32
    %60 = vector.broadcast %c3_i32 : i32 to vector<2x128xi32>
    %61 = arith.cmpi eq, %11, %60 : vector<2x128xi32>
    %62 = arith.extui %61 : vector<2x128xi1> to vector<2x128xi32>
    %63 = arith.sitofp %62 : vector<2x128xi32> to vector<2x128xf32>
    %cst_29 = arith.constant dense<0.000000e+00> : vector<128xf32>
    %64 = vector.multi_reduction <add>, %63, %cst_29 [0] : vector<2x128xf32> to vector<128xf32>
    %65 = vector.shape_cast %64 : vector<128xf32> to vector<1x128xf32>
    %cst_30 = arith.constant 0.000000e+00 : f32
    %66 = vector.broadcast %cst_30 : f32 to vector<2x128xf32>
    %67 = arith.select %61, %3, %66 : vector<2x128xi1>, vector<2x128xf32>
    %cst_31 = arith.constant dense<0.000000e+00> : vector<128xf32>
    %68 = vector.multi_reduction <add>, %67, %cst_31 [0] : vector<2x128xf32> to vector<128xf32>
    %69 = vector.shape_cast %68 : vector<128xf32> to vector<1x128xf32>
    %c0_32 = arith.constant 0 : index
    %c3 = arith.constant 3 : index
    %c0_33 = arith.constant 0 : index
    %70 = vector.load %arg3[%c0_32, %c3, %c0_33] : memref<1x20x128xf32, #tpu.memory_space<vmem>>, vector<1x1x128xf32>
    %71 = vector.shape_cast %70 : vector<1x1x128xf32> to vector<1x128xf32>
    %72 = vector.shape_cast %65 : vector<1x128xf32> to vector<1x1x128xf32>
    tpu.vector_store %arg3[%c0_32, %c3, %c0_33], %72 {strides = array<i32>} : memref<1x20x128xf32, #tpu.memory_space<vmem>>, vector<1x1x128xf32>,
    %c0_34 = arith.constant 0 : index
    %c3_35 = arith.constant 3 : index
    %c0_36 = arith.constant 0 : index
    %73 = vector.load %arg4[%c0_34, %c3_35, %c0_36] : memref<1x20x128xf32, #tpu.memory_space<vmem>>, vector<1x1x128xf32>
    %74 = vector.shape_cast %73 : vector<1x1x128xf32> to vector<1x128xf32>
    %75 = vector.shape_cast %69 : vector<1x128xf32> to vector<1x1x128xf32>
    tpu.vector_store %arg4[%c0_34, %c3_35, %c0_36], %75 {strides = array<i32>} : memref<1x20x128xf32, #tpu.memory_space<vmem>>, vector<1x1x128xf32>,
    %c4_i32 = arith.constant 4 : i32
    %76 = vector.broadcast %c4_i32 : i32 to vector<2x128xi32>
    %77 = arith.cmpi eq, %11, %76 : vector<2x128xi32>
    %78 = arith.extui %77 : vector<2x128xi1> to vector<2x128xi32>
    %79 = arith.sitofp %78 : vector<2x128xi32> to vector<2x128xf32>
    %cst_37 = arith.constant dense<0.000000e+00> : vector<128xf32>
    %80 = vector.multi_reduction <add>, %79, %cst_37 [0] : vector<2x128xf32> to vector<128xf32>
    %81 = vector.shape_cast %80 : vector<128xf32> to vector<1x128xf32>
    %cst_38 = arith.constant 0.000000e+00 : f32
    %82 = vector.broadcast %cst_38 : f32 to vector<2x128xf32>
    %83 = arith.select %77, %3, %82 : vector<2x128xi1>, vector<2x128xf32>
    %cst_39 = arith.constant dense<0.000000e+00> : vector<128xf32>
    %84 = vector.multi_reduction <add>, %83, %cst_39 [0] : vector<2x128xf32> to vector<128xf32>
    %85 = vector.shape_cast %84 : vector<128xf32> to vector<1x128xf32>
    %c0_40 = arith.constant 0 : index
    %c4 = arith.constant 4 : index
    %c0_41 = arith.constant 0 : index
    %86 = vector.load %arg3[%c0_40, %c4, %c0_41] : memref<1x20x128xf32, #tpu.memory_space<vmem>>, vector<1x1x128xf32>
    %87 = vector.shape_cast %86 : vector<1x1x128xf32> to vector<1x128xf32>
    %88 = vector.shape_cast %81 : vector<1x128xf32> to vector<1x1x128xf32>
    tpu.vector_store %arg3[%c0_40, %c4, %c0_41], %88 {strides = array<i32>} : memref<1x20x128xf32, #tpu.memory_space<vmem>>, vector<1x1x128xf32>,
    %c0_42 = arith.constant 0 : index
    %c4_43 = arith.constant 4 : index
    %c0_44 = arith.constant 0 : index
    %89 = vector.load %arg4[%c0_42, %c4_43, %c0_44] : memref<1x20x128xf32, #tpu.memory_space<vmem>>, vector<1x1x128xf32>
    %90 = vector.shape_cast %89 : vector<1x1x128xf32> to vector<1x128xf32>
    %91 = vector.shape_cast %85 : vector<1x128xf32> to vector<1x1x128xf32>
    tpu.vector_store %arg4[%c0_42, %c4_43, %c0_44], %91 {strides = array<i32>} : memref<1x20x128xf32, #tpu.memory_space<vmem>>, vector<1x1x128xf32>,
    %c5_i32 = arith.constant 5 : i32
    %92 = vector.broadcast %c5_i32 : i32 to vector<2x128xi32>
    %93 = arith.cmpi eq, %11, %92 : vector<2x128xi32>
    %94 = arith.extui %93 : vector<2x128xi1> to vector<2x128xi32>
    %95 = arith.sitofp %94 : vector<2x128xi32> to vector<2x128xf32>
    %cst_45 = arith.constant dense<0.000000e+00> : vector<128xf32>
    %96 = vector.multi_reduction <add>, %95, %cst_45 [0] : vector<2x128xf32> to vector<128xf32>
    %97 = vector.shape_cast %96 : vector<128xf32> to vector<1x128xf32>
    %cst_46 = arith.constant 0.000000e+00 : f32
    %98 = vector.broadcast %cst_46 : f32 to vector<2x128xf32>
    %99 = arith.select %93, %3, %98 : vector<2x128xi1>, vector<2x128xf32>
    %cst_47 = arith.constant dense<0.000000e+00> : vector<128xf32>
    %100 = vector.multi_reduction <add>, %99, %cst_47 [0] : vector<2x128xf32> to vector<128xf32>
    %101 = vector.shape_cast %100 : vector<128xf32> to vector<1x128xf32>
    %c0_48 = arith.constant 0 : index
    %c5 = arith.constant 5 : index
    %c0_49 = arith.constant 0 : index
    %102 = vector.load %arg3[%c0_48, %c5, %c0_49] : memref<1x20x128xf32, #tpu.memory_space<vmem>>, vector<1x1x128xf32>
    %103 = vector.shape_cast %102 : vector<1x1x128xf32> to vector<1x128xf32>
    %104 = vector.shape_cast %97 : vector<1x128xf32> to vector<1x1x128xf32>
    tpu.vector_store %arg3[%c0_48, %c5, %c0_49], %104 {strides = array<i32>} : memref<1x20x128xf32, #tpu.memory_space<vmem>>, vector<1x1x128xf32>,
    %c0_50 = arith.constant 0 : index
    %c5_51 = arith.constant 5 : index
    %c0_52 = arith.constant 0 : index
    %105 = vector.load %arg4[%c0_50, %c5_51, %c0_52] : memref<1x20x128xf32, #tpu.memory_space<vmem>>, vector<1x1x128xf32>
    %106 = vector.shape_cast %105 : vector<1x1x128xf32> to vector<1x128xf32>
    %107 = vector.shape_cast %101 : vector<1x128xf32> to vector<1x1x128xf32>
    tpu.vector_store %arg4[%c0_50, %c5_51, %c0_52], %107 {strides = array<i32>} : memref<1x20x128xf32, #tpu.memory_space<vmem>>, vector<1x1x128xf32>,
    %c6_i32 = arith.constant 6 : i32
    %108 = vector.broadcast %c6_i32 : i32 to vector<2x128xi32>
    %109 = arith.cmpi eq, %11, %108 : vector<2x128xi32>
    %110 = arith.extui %109 : vector<2x128xi1> to vector<2x128xi32>
    %111 = arith.sitofp %110 : vector<2x128xi32> to vector<2x128xf32>
    %cst_53 = arith.constant dense<0.000000e+00> : vector<128xf32>
    %112 = vector.multi_reduction <add>, %111, %cst_53 [0] : vector<2x128xf32> to vector<128xf32>
    %113 = vector.shape_cast %112 : vector<128xf32> to vector<1x128xf32>
    %cst_54 = arith.constant 0.000000e+00 : f32
    %114 = vector.broadcast %cst_54 : f32 to vector<2x128xf32>
    %115 = arith.select %109, %3, %114 : vector<2x128xi1>, vector<2x128xf32>
    %cst_55 = arith.constant dense<0.000000e+00> : vector<128xf32>
    %116 = vector.multi_reduction <add>, %115, %cst_55 [0] : vector<2x128xf32> to vector<128xf32>
    %117 = vector.shape_cast %116 : vector<128xf32> to vector<1x128xf32>
    %c0_56 = arith.constant 0 : index
    %c6 = arith.constant 6 : index
    %c0_57 = arith.constant 0 : index
    %118 = vector.load %arg3[%c0_56, %c6, %c0_57] : memref<1x20x128xf32, #tpu.memory_space<vmem>>, vector<1x1x128xf32>
    %119 = vector.shape_cast %118 : vector<1x1x128xf32> to vector<1x128xf32>
    %120 = vector.shape_cast %113 : vector<1x128xf32> to vector<1x1x128xf32>
    tpu.vector_store %arg3[%c0_56, %c6, %c0_57], %120 {strides = array<i32>} : memref<1x20x128xf32, #tpu.memory_space<vmem>>, vector<1x1x128xf32>,
    %c0_58 = arith.constant 0 : index
    %c6_59 = arith.constant 6 : index
    %c0_60 = arith.constant 0 : index
    %121 = vector.load %arg4[%c0_58, %c6_59, %c0_60] : memref<1x20x128xf32, #tpu.memory_space<vmem>>, vector<1x1x128xf32>
    %122 = vector.shape_cast %121 : vector<1x1x128xf32> to vector<1x128xf32>
    %123 = vector.shape_cast %117 : vector<1x128xf32> to vector<1x1x128xf32>
    tpu.vector_store %arg4[%c0_58, %c6_59, %c0_60], %123 {strides = array<i32>} : memref<1x20x128xf32, #tpu.memory_space<vmem>>, vector<1x1x128xf32>,
    %c7_i32 = arith.constant 7 : i32
    %124 = vector.broadcast %c7_i32 : i32 to vector<2x128xi32>
    %125 = arith.cmpi eq, %11, %124 : vector<2x128xi32>
    %126 = arith.extui %125 : vector<2x128xi1> to vector<2x128xi32>
    %127 = arith.sitofp %126 : vector<2x128xi32> to vector<2x128xf32>
    %cst_61 = arith.constant dense<0.000000e+00> : vector<128xf32>
    %128 = vector.multi_reduction <add>, %127, %cst_61 [0] : vector<2x128xf32> to vector<128xf32>
    %129 = vector.shape_cast %128 : vector<128xf32> to vector<1x128xf32>
    %cst_62 = arith.constant 0.000000e+00 : f32
    %130 = vector.broadcast %cst_62 : f32 to vector<2x128xf32>
    %131 = arith.select %125, %3, %130 : vector<2x128xi1>, vector<2x128xf32>
    %cst_63 = arith.constant dense<0.000000e+00> : vector<128xf32>
    %132 = vector.multi_reduction <add>, %131, %cst_63 [0] : vector<2x128xf32> to vector<128xf32>
    %133 = vector.shape_cast %132 : vector<128xf32> to vector<1x128xf32>
    %c0_64 = arith.constant 0 : index
    %c7 = arith.constant 7 : index
    %c0_65 = arith.constant 0 : index
    %134 = vector.load %arg3[%c0_64, %c7, %c0_65] : memref<1x20x128xf32, #tpu.memory_space<vmem>>, vector<1x1x128xf32>
    %135 = vector.shape_cast %134 : vector<1x1x128xf32> to vector<1x128xf32>
    %136 = vector.shape_cast %129 : vector<1x128xf32> to vector<1x1x128xf32>
    tpu.vector_store %arg3[%c0_64, %c7, %c0_65], %136 {strides = array<i32>} : memref<1x20x128xf32, #tpu.memory_space<vmem>>, vector<1x1x128xf32>,
    %c0_66 = arith.constant 0 : index
    %c7_67 = arith.constant 7 : index
    %c0_68 = arith.constant 0 : index
    %137 = vector.load %arg4[%c0_66, %c7_67, %c0_68] : memref<1x20x128xf32, #tpu.memory_space<vmem>>, vector<1x1x128xf32>
    %138 = vector.shape_cast %137 : vector<1x1x128xf32> to vector<1x128xf32>
    %139 = vector.shape_cast %133 : vector<1x128xf32> to vector<1x1x128xf32>
    tpu.vector_store %arg4[%c0_66, %c7_67, %c0_68], %139 {strides = array<i32>} : memref<1x20x128xf32, #tpu.memory_space<vmem>>, vector<1x1x128xf32>,
    %c8_i32 = arith.constant 8 : i32
    %140 = vector.broadcast %c8_i32 : i32 to vector<2x128xi32>
    %141 = arith.cmpi eq, %11, %140 : vector<2x128xi32>
    %142 = arith.extui %141 : vector<2x128xi1> to vector<2x128xi32>
    %143 = arith.sitofp %142 : vector<2x128xi32> to vector<2x128xf32>
    %cst_69 = arith.constant dense<0.000000e+00> : vector<128xf32>
    %144 = vector.multi_reduction <add>, %143, %cst_69 [0] : vector<2x128xf32> to vector<128xf32>
    %145 = vector.shape_cast %144 : vector<128xf32> to vector<1x128xf32>
    %cst_70 = arith.constant 0.000000e+00 : f32
    %146 = vector.broadcast %cst_70 : f32 to vector<2x128xf32>
    %147 = arith.select %141, %3, %146 : vector<2x128xi1>, vector<2x128xf32>
    %cst_71 = arith.constant dense<0.000000e+00> : vector<128xf32>
    %148 = vector.multi_reduction <add>, %147, %cst_71 [0] : vector<2x128xf32> to vector<128xf32>
    %149 = vector.shape_cast %148 : vector<128xf32> to vector<1x128xf32>
    %c0_72 = arith.constant 0 : index
    %c8 = arith.constant 8 : index
    %c0_73 = arith.constant 0 : index
    %150 = vector.load %arg3[%c0_72, %c8, %c0_73] : memref<1x20x128xf32, #tpu.memory_space<vmem>>, vector<1x1x128xf32>
    %151 = vector.shape_cast %150 : vector<1x1x128xf32> to vector<1x128xf32>
    %152 = vector.shape_cast %145 : vector<1x128xf32> to vector<1x1x128xf32>
    tpu.vector_store %arg3[%c0_72, %c8, %c0_73], %152 {strides = array<i32>} : memref<1x20x128xf32, #tpu.memory_space<vmem>>, vector<1x1x128xf32>,
    %c0_74 = arith.constant 0 : index
    %c8_75 = arith.constant 8 : index
    %c0_76 = arith.constant 0 : index
    %153 = vector.load %arg4[%c0_74, %c8_75, %c0_76] : memref<1x20x128xf32, #tpu.memory_space<vmem>>, vector<1x1x128xf32>
    %154 = vector.shape_cast %153 : vector<1x1x128xf32> to vector<1x128xf32>
    %155 = vector.shape_cast %149 : vector<1x128xf32> to vector<1x1x128xf32>
    tpu.vector_store %arg4[%c0_74, %c8_75, %c0_76], %155 {strides = array<i32>} : memref<1x20x128xf32, #tpu.memory_space<vmem>>, vector<1x1x128xf32>,
    %c9_i32 = arith.constant 9 : i32
    %156 = vector.broadcast %c9_i32 : i32 to vector<2x128xi32>
    %157 = arith.cmpi eq, %11, %156 : vector<2x128xi32>
    %158 = arith.extui %157 : vector<2x128xi1> to vector<2x128xi32>
    %159 = arith.sitofp %158 : vector<2x128xi32> to vector<2x128xf32>
    %cst_77 = arith.constant dense<0.000000e+00> : vector<128xf32>
    %160 = vector.multi_reduction <add>, %159, %cst_77 [0] : vector<2x128xf32> to vector<128xf32>
    %161 = vector.shape_cast %160 : vector<128xf32> to vector<1x128xf32>
    %cst_78 = arith.constant 0.000000e+00 : f32
    %162 = vector.broadcast %cst_78 : f32 to vector<2x128xf32>
    %163 = arith.select %157, %3, %162 : vector<2x128xi1>, vector<2x128xf32>
    %cst_79 = arith.constant dense<0.000000e+00> : vector<128xf32>
    %164 = vector.multi_reduction <add>, %163, %cst_79 [0] : vector<2x128xf32> to vector<128xf32>
    %165 = vector.shape_cast %164 : vector<128xf32> to vector<1x128xf32>
    %c0_80 = arith.constant 0 : index
    %c9 = arith.constant 9 : index
    %c0_81 = arith.constant 0 : index
    %166 = vector.load %arg3[%c0_80, %c9, %c0_81] : memref<1x20x128xf32, #tpu.memory_space<vmem>>, vector<1x1x128xf32>
    %167 = vector.shape_cast %166 : vector<1x1x128xf32> to vector<1x128xf32>
    %168 = vector.shape_cast %161 : vector<1x128xf32> to vector<1x1x128xf32>
    tpu.vector_store %arg3[%c0_80, %c9, %c0_81], %168 {strides = array<i32>} : memref<1x20x128xf32, #tpu.memory_space<vmem>>, vector<1x1x128xf32>,
    %c0_82 = arith.constant 0 : index
    %c9_83 = arith.constant 9 : index
    %c0_84 = arith.constant 0 : index
    %169 = vector.load %arg4[%c0_82, %c9_83, %c0_84] : memref<1x20x128xf32, #tpu.memory_space<vmem>>, vector<1x1x128xf32>
    %170 = vector.shape_cast %169 : vector<1x1x128xf32> to vector<1x128xf32>
    %171 = vector.shape_cast %165 : vector<1x128xf32> to vector<1x1x128xf32>
    tpu.vector_store %arg4[%c0_82, %c9_83, %c0_84], %171 {strides = array<i32>} : memref<1x20x128xf32, #tpu.memory_space<vmem>>, vector<1x1x128xf32>,
    %c10_i32 = arith.constant 10 : i32
    %172 = vector.broadcast %c10_i32 : i32 to vector<2x128xi32>
    %173 = arith.cmpi eq, %11, %172 : vector<2x128xi32>
    %174 = arith.extui %173 : vector<2x128xi1> to vector<2x128xi32>
    %175 = arith.sitofp %174 : vector<2x128xi32> to vector<2x128xf32>
    %cst_85 = arith.constant dense<0.000000e+00> : vector<128xf32>
    %176 = vector.multi_reduction <add>, %175, %cst_85 [0] : vector<2x128xf32> to vector<128xf32>
    %177 = vector.shape_cast %176 : vector<128xf32> to vector<1x128xf32>
    %cst_86 = arith.constant 0.000000e+00 : f32
    %178 = vector.broadcast %cst_86 : f32 to vector<2x128xf32>
    %179 = arith.select %173, %3, %178 : vector<2x128xi1>, vector<2x128xf32>
    %cst_87 = arith.constant dense<0.000000e+00> : vector<128xf32>
    %180 = vector.multi_reduction <add>, %179, %cst_87 [0] : vector<2x128xf32> to vector<128xf32>
    %181 = vector.shape_cast %180 : vector<128xf32> to vector<1x128xf32>
    %c0_88 = arith.constant 0 : index
    %c10 = arith.constant 10 : index
    %c0_89 = arith.constant 0 : index
    %182 = vector.load %arg3[%c0_88, %c10, %c0_89] : memref<1x20x128xf32, #tpu.memory_space<vmem>>, vector<1x1x128xf32>
    %183 = vector.shape_cast %182 : vector<1x1x128xf32> to vector<1x128xf32>
    %184 = vector.shape_cast %177 : vector<1x128xf32> to vector<1x1x128xf32>
    tpu.vector_store %arg3[%c0_88, %c10, %c0_89], %184 {strides = array<i32>} : memref<1x20x128xf32, #tpu.memory_space<vmem>>, vector<1x1x128xf32>,
    %c0_90 = arith.constant 0 : index
    %c10_91 = arith.constant 10 : index
    %c0_92 = arith.constant 0 : index
    %185 = vector.load %arg4[%c0_90, %c10_91, %c0_92] : memref<1x20x128xf32, #tpu.memory_space<vmem>>, vector<1x1x128xf32>
    %186 = vector.shape_cast %185 : vector<1x1x128xf32> to vector<1x128xf32>
    %187 = vector.shape_cast %181 : vector<1x128xf32> to vector<1x1x128xf32>
    tpu.vector_store %arg4[%c0_90, %c10_91, %c0_92], %187 {strides = array<i32>} : memref<1x20x128xf32, #tpu.memory_space<vmem>>, vector<1x1x128xf32>,
    %c11_i32 = arith.constant 11 : i32
    %188 = vector.broadcast %c11_i32 : i32 to vector<2x128xi32>
    %189 = arith.cmpi eq, %11, %188 : vector<2x128xi32>
    %190 = arith.extui %189 : vector<2x128xi1> to vector<2x128xi32>
    %191 = arith.sitofp %190 : vector<2x128xi32> to vector<2x128xf32>
    %cst_93 = arith.constant dense<0.000000e+00> : vector<128xf32>
    %192 = vector.multi_reduction <add>, %191, %cst_93 [0] : vector<2x128xf32> to vector<128xf32>
    %193 = vector.shape_cast %192 : vector<128xf32> to vector<1x128xf32>
    %cst_94 = arith.constant 0.000000e+00 : f32
    %194 = vector.broadcast %cst_94 : f32 to vector<2x128xf32>
    %195 = arith.select %189, %3, %194 : vector<2x128xi1>, vector<2x128xf32>
    %cst_95 = arith.constant dense<0.000000e+00> : vector<128xf32>
    %196 = vector.multi_reduction <add>, %195, %cst_95 [0] : vector<2x128xf32> to vector<128xf32>
    %197 = vector.shape_cast %196 : vector<128xf32> to vector<1x128xf32>
    %c0_96 = arith.constant 0 : index
    %c11 = arith.constant 11 : index
    %c0_97 = arith.constant 0 : index
    %198 = vector.load %arg3[%c0_96, %c11, %c0_97] : memref<1x20x128xf32, #tpu.memory_space<vmem>>, vector<1x1x128xf32>
    %199 = vector.shape_cast %198 : vector<1x1x128xf32> to vector<1x128xf32>
    %200 = vector.shape_cast %193 : vector<1x128xf32> to vector<1x1x128xf32>
    tpu.vector_store %arg3[%c0_96, %c11, %c0_97], %200 {strides = array<i32>} : memref<1x20x128xf32, #tpu.memory_space<vmem>>, vector<1x1x128xf32>,
    %c0_98 = arith.constant 0 : index
    %c11_99 = arith.constant 11 : index
    %c0_100 = arith.constant 0 : index
    %201 = vector.load %arg4[%c0_98, %c11_99, %c0_100] : memref<1x20x128xf32, #tpu.memory_space<vmem>>, vector<1x1x128xf32>
    %202 = vector.shape_cast %201 : vector<1x1x128xf32> to vector<1x128xf32>
    %203 = vector.shape_cast %197 : vector<1x128xf32> to vector<1x1x128xf32>
    tpu.vector_store %arg4[%c0_98, %c11_99, %c0_100], %203 {strides = array<i32>} : memref<1x20x128xf32, #tpu.memory_space<vmem>>, vector<1x1x128xf32>,
    %c12_i32 = arith.constant 12 : i32
    %204 = vector.broadcast %c12_i32 : i32 to vector<2x128xi32>
    %205 = arith.cmpi eq, %11, %204 : vector<2x128xi32>
    %206 = arith.extui %205 : vector<2x128xi1> to vector<2x128xi32>
    %207 = arith.sitofp %206 : vector<2x128xi32> to vector<2x128xf32>
    %cst_101 = arith.constant dense<0.000000e+00> : vector<128xf32>
    %208 = vector.multi_reduction <add>, %207, %cst_101 [0] : vector<2x128xf32> to vector<128xf32>
    %209 = vector.shape_cast %208 : vector<128xf32> to vector<1x128xf32>
    %cst_102 = arith.constant 0.000000e+00 : f32
    %210 = vector.broadcast %cst_102 : f32 to vector<2x128xf32>
    %211 = arith.select %205, %3, %210 : vector<2x128xi1>, vector<2x128xf32>
    %cst_103 = arith.constant dense<0.000000e+00> : vector<128xf32>
    %212 = vector.multi_reduction <add>, %211, %cst_103 [0] : vector<2x128xf32> to vector<128xf32>
    %213 = vector.shape_cast %212 : vector<128xf32> to vector<1x128xf32>
    %c0_104 = arith.constant 0 : index
    %c12 = arith.constant 12 : index
    %c0_105 = arith.constant 0 : index
    %214 = vector.load %arg3[%c0_104, %c12, %c0_105] : memref<1x20x128xf32, #tpu.memory_space<vmem>>, vector<1x1x128xf32>
    %215 = vector.shape_cast %214 : vector<1x1x128xf32> to vector<1x128xf32>
    %216 = vector.shape_cast %209 : vector<1x128xf32> to vector<1x1x128xf32>
    tpu.vector_store %arg3[%c0_104, %c12, %c0_105], %216 {strides = array<i32>} : memref<1x20x128xf32, #tpu.memory_space<vmem>>, vector<1x1x128xf32>,
    %c0_106 = arith.constant 0 : index
    %c12_107 = arith.constant 12 : index
    %c0_108 = arith.constant 0 : index
    %217 = vector.load %arg4[%c0_106, %c12_107, %c0_108] : memref<1x20x128xf32, #tpu.memory_space<vmem>>, vector<1x1x128xf32>
    %218 = vector.shape_cast %217 : vector<1x1x128xf32> to vector<1x128xf32>
    %219 = vector.shape_cast %213 : vector<1x128xf32> to vector<1x1x128xf32>
    tpu.vector_store %arg4[%c0_106, %c12_107, %c0_108], %219 {strides = array<i32>} : memref<1x20x128xf32, #tpu.memory_space<vmem>>, vector<1x1x128xf32>,
    %c13_i32 = arith.constant 13 : i32
    %220 = vector.broadcast %c13_i32 : i32 to vector<2x128xi32>
    %221 = arith.cmpi eq, %11, %220 : vector<2x128xi32>
    %222 = arith.extui %221 : vector<2x128xi1> to vector<2x128xi32>
    %223 = arith.sitofp %222 : vector<2x128xi32> to vector<2x128xf32>
    %cst_109 = arith.constant dense<0.000000e+00> : vector<128xf32>
    %224 = vector.multi_reduction <add>, %223, %cst_109 [0] : vector<2x128xf32> to vector<128xf32>
    %225 = vector.shape_cast %224 : vector<128xf32> to vector<1x128xf32>
    %cst_110 = arith.constant 0.000000e+00 : f32
    %226 = vector.broadcast %cst_110 : f32 to vector<2x128xf32>
    %227 = arith.select %221, %3, %226 : vector<2x128xi1>, vector<2x128xf32>
    %cst_111 = arith.constant dense<0.000000e+00> : vector<128xf32>
    %228 = vector.multi_reduction <add>, %227, %cst_111 [0] : vector<2x128xf32> to vector<128xf32>
    %229 = vector.shape_cast %228 : vector<128xf32> to vector<1x128xf32>
    %c0_112 = arith.constant 0 : index
    %c13 = arith.constant 13 : index
    %c0_113 = arith.constant 0 : index
    %230 = vector.load %arg3[%c0_112, %c13, %c0_113] : memref<1x20x128xf32, #tpu.memory_space<vmem>>, vector<1x1x128xf32>
    %231 = vector.shape_cast %230 : vector<1x1x128xf32> to vector<1x128xf32>
    %232 = vector.shape_cast %225 : vector<1x128xf32> to vector<1x1x128xf32>
    tpu.vector_store %arg3[%c0_112, %c13, %c0_113], %232 {strides = array<i32>} : memref<1x20x128xf32, #tpu.memory_space<vmem>>, vector<1x1x128xf32>,
    %c0_114 = arith.constant 0 : index
    %c13_115 = arith.constant 13 : index
    %c0_116 = arith.constant 0 : index
    %233 = vector.load %arg4[%c0_114, %c13_115, %c0_116] : memref<1x20x128xf32, #tpu.memory_space<vmem>>, vector<1x1x128xf32>
    %234 = vector.shape_cast %233 : vector<1x1x128xf32> to vector<1x128xf32>
    %235 = vector.shape_cast %229 : vector<1x128xf32> to vector<1x1x128xf32>
    tpu.vector_store %arg4[%c0_114, %c13_115, %c0_116], %235 {strides = array<i32>} : memref<1x20x128xf32, #tpu.memory_space<vmem>>, vector<1x1x128xf32>,
    %c14_i32 = arith.constant 14 : i32
    %236 = vector.broadcast %c14_i32 : i32 to vector<2x128xi32>
    %237 = arith.cmpi eq, %11, %236 : vector<2x128xi32>
    %238 = arith.extui %237 : vector<2x128xi1> to vector<2x128xi32>
    %239 = arith.sitofp %238 : vector<2x128xi32> to vector<2x128xf32>
    %cst_117 = arith.constant dense<0.000000e+00> : vector<128xf32>
    %240 = vector.multi_reduction <add>, %239, %cst_117 [0] : vector<2x128xf32> to vector<128xf32>
    %241 = vector.shape_cast %240 : vector<128xf32> to vector<1x128xf32>
    %cst_118 = arith.constant 0.000000e+00 : f32
    %242 = vector.broadcast %cst_118 : f32 to vector<2x128xf32>
    %243 = arith.select %237, %3, %242 : vector<2x128xi1>, vector<2x128xf32>
    %cst_119 = arith.constant dense<0.000000e+00> : vector<128xf32>
    %244 = vector.multi_reduction <add>, %243, %cst_119 [0] : vector<2x128xf32> to vector<128xf32>
    %245 = vector.shape_cast %244 : vector<128xf32> to vector<1x128xf32>
    %c0_120 = arith.constant 0 : index
    %c14 = arith.constant 14 : index
    %c0_121 = arith.constant 0 : index
    %246 = vector.load %arg3[%c0_120, %c14, %c0_121] : memref<1x20x128xf32, #tpu.memory_space<vmem>>, vector<1x1x128xf32>
    %247 = vector.shape_cast %246 : vector<1x1x128xf32> to vector<1x128xf32>
    %248 = vector.shape_cast %241 : vector<1x128xf32> to vector<1x1x128xf32>
    tpu.vector_store %arg3[%c0_120, %c14, %c0_121], %248 {strides = array<i32>} : memref<1x20x128xf32, #tpu.memory_space<vmem>>, vector<1x1x128xf32>,
    %c0_122 = arith.constant 0 : index
    %c14_123 = arith.constant 14 : index
    %c0_124 = arith.constant 0 : index
    %249 = vector.load %arg4[%c0_122, %c14_123, %c0_124] : memref<1x20x128xf32, #tpu.memory_space<vmem>>, vector<1x1x128xf32>
    %250 = vector.shape_cast %249 : vector<1x1x128xf32> to vector<1x128xf32>
    %251 = vector.shape_cast %245 : vector<1x128xf32> to vector<1x1x128xf32>
    tpu.vector_store %arg4[%c0_122, %c14_123, %c0_124], %251 {strides = array<i32>} : memref<1x20x128xf32, #tpu.memory_space<vmem>>, vector<1x1x128xf32>,
    %c15_i32 = arith.constant 15 : i32
    %252 = vector.broadcast %c15_i32 : i32 to vector<2x128xi32>
    %253 = arith.cmpi eq, %11, %252 : vector<2x128xi32>
    %254 = arith.extui %253 : vector<2x128xi1> to vector<2x128xi32>
    %255 = arith.sitofp %254 : vector<2x128xi32> to vector<2x128xf32>
    %cst_125 = arith.constant dense<0.000000e+00> : vector<128xf32>
    %256 = vector.multi_reduction <add>, %255, %cst_125 [0] : vector<2x128xf32> to vector<128xf32>
    %257 = vector.shape_cast %256 : vector<128xf32> to vector<1x128xf32>
    %cst_126 = arith.constant 0.000000e+00 : f32
    %258 = vector.broadcast %cst_126 : f32 to vector<2x128xf32>
    %259 = arith.select %253, %3, %258 : vector<2x128xi1>, vector<2x128xf32>
    %cst_127 = arith.constant dense<0.000000e+00> : vector<128xf32>
    %260 = vector.multi_reduction <add>, %259, %cst_127 [0] : vector<2x128xf32> to vector<128xf32>
    %261 = vector.shape_cast %260 : vector<128xf32> to vector<1x128xf32>
    %c0_128 = arith.constant 0 : index
    %c15 = arith.constant 15 : index
    %c0_129 = arith.constant 0 : index
    %262 = vector.load %arg3[%c0_128, %c15, %c0_129] : memref<1x20x128xf32, #tpu.memory_space<vmem>>, vector<1x1x128xf32>
    %263 = vector.shape_cast %262 : vector<1x1x128xf32> to vector<1x128xf32>
    %264 = vector.shape_cast %257 : vector<1x128xf32> to vector<1x1x128xf32>
    tpu.vector_store %arg3[%c0_128, %c15, %c0_129], %264 {strides = array<i32>} : memref<1x20x128xf32, #tpu.memory_space<vmem>>, vector<1x1x128xf32>,
    %c0_130 = arith.constant 0 : index
    %c15_131 = arith.constant 15 : index
    %c0_132 = arith.constant 0 : index
    %265 = vector.load %arg4[%c0_130, %c15_131, %c0_132] : memref<1x20x128xf32, #tpu.memory_space<vmem>>, vector<1x1x128xf32>
    %266 = vector.shape_cast %265 : vector<1x1x128xf32> to vector<1x128xf32>
    %267 = vector.shape_cast %261 : vector<1x128xf32> to vector<1x1x128xf32>
    tpu.vector_store %arg4[%c0_130, %c15_131, %c0_132], %267 {strides = array<i32>} : memref<1x20x128xf32, #tpu.memory_space<vmem>>, vector<1x1x128xf32>,
    %c16_i32 = arith.constant 16 : i32
    %268 = vector.broadcast %c16_i32 : i32 to vector<2x128xi32>
    %269 = arith.cmpi eq, %11, %268 : vector<2x128xi32>
    %270 = arith.extui %269 : vector<2x128xi1> to vector<2x128xi32>
    %271 = arith.sitofp %270 : vector<2x128xi32> to vector<2x128xf32>
    %cst_133 = arith.constant dense<0.000000e+00> : vector<128xf32>
    %272 = vector.multi_reduction <add>, %271, %cst_133 [0] : vector<2x128xf32> to vector<128xf32>
    %273 = vector.shape_cast %272 : vector<128xf32> to vector<1x128xf32>
    %cst_134 = arith.constant 0.000000e+00 : f32
    %274 = vector.broadcast %cst_134 : f32 to vector<2x128xf32>
    %275 = arith.select %269, %3, %274 : vector<2x128xi1>, vector<2x128xf32>
    %cst_135 = arith.constant dense<0.000000e+00> : vector<128xf32>
    %276 = vector.multi_reduction <add>, %275, %cst_135 [0] : vector<2x128xf32> to vector<128xf32>
    %277 = vector.shape_cast %276 : vector<128xf32> to vector<1x128xf32>
    %c0_136 = arith.constant 0 : index
    %c16 = arith.constant 16 : index
    %c0_137 = arith.constant 0 : index
    %278 = vector.load %arg3[%c0_136, %c16, %c0_137] : memref<1x20x128xf32, #tpu.memory_space<vmem>>, vector<1x1x128xf32>
    %279 = vector.shape_cast %278 : vector<1x1x128xf32> to vector<1x128xf32>
    %280 = vector.shape_cast %273 : vector<1x128xf32> to vector<1x1x128xf32>
    tpu.vector_store %arg3[%c0_136, %c16, %c0_137], %280 {strides = array<i32>} : memref<1x20x128xf32, #tpu.memory_space<vmem>>, vector<1x1x128xf32>,
    %c0_138 = arith.constant 0 : index
    %c16_139 = arith.constant 16 : index
    %c0_140 = arith.constant 0 : index
    %281 = vector.load %arg4[%c0_138, %c16_139, %c0_140] : memref<1x20x128xf32, #tpu.memory_space<vmem>>, vector<1x1x128xf32>
    %282 = vector.shape_cast %281 : vector<1x1x128xf32> to vector<1x128xf32>
    %283 = vector.shape_cast %277 : vector<1x128xf32> to vector<1x1x128xf32>
    tpu.vector_store %arg4[%c0_138, %c16_139, %c0_140], %283 {strides = array<i32>} : memref<1x20x128xf32, #tpu.memory_space<vmem>>, vector<1x1x128xf32>,
    %c17_i32 = arith.constant 17 : i32
    %284 = vector.broadcast %c17_i32 : i32 to vector<2x128xi32>
    %285 = arith.cmpi eq, %11, %284 : vector<2x128xi32>
    %286 = arith.extui %285 : vector<2x128xi1> to vector<2x128xi32>
    %287 = arith.sitofp %286 : vector<2x128xi32> to vector<2x128xf32>
    %cst_141 = arith.constant dense<0.000000e+00> : vector<128xf32>
    %288 = vector.multi_reduction <add>, %287, %cst_141 [0] : vector<2x128xf32> to vector<128xf32>
    %289 = vector.shape_cast %288 : vector<128xf32> to vector<1x128xf32>
    %cst_142 = arith.constant 0.000000e+00 : f32
    %290 = vector.broadcast %cst_142 : f32 to vector<2x128xf32>
    %291 = arith.select %285, %3, %290 : vector<2x128xi1>, vector<2x128xf32>
    %cst_143 = arith.constant dense<0.000000e+00> : vector<128xf32>
    %292 = vector.multi_reduction <add>, %291, %cst_143 [0] : vector<2x128xf32> to vector<128xf32>
    %293 = vector.shape_cast %292 : vector<128xf32> to vector<1x128xf32>
    %c0_144 = arith.constant 0 : index
    %c17 = arith.constant 17 : index
    %c0_145 = arith.constant 0 : index
    %294 = vector.load %arg3[%c0_144, %c17, %c0_145] : memref<1x20x128xf32, #tpu.memory_space<vmem>>, vector<1x1x128xf32>
    %295 = vector.shape_cast %294 : vector<1x1x128xf32> to vector<1x128xf32>
    %296 = vector.shape_cast %289 : vector<1x128xf32> to vector<1x1x128xf32>
    tpu.vector_store %arg3[%c0_144, %c17, %c0_145], %296 {strides = array<i32>} : memref<1x20x128xf32, #tpu.memory_space<vmem>>, vector<1x1x128xf32>,
    %c0_146 = arith.constant 0 : index
    %c17_147 = arith.constant 17 : index
    %c0_148 = arith.constant 0 : index
    %297 = vector.load %arg4[%c0_146, %c17_147, %c0_148] : memref<1x20x128xf32, #tpu.memory_space<vmem>>, vector<1x1x128xf32>
    %298 = vector.shape_cast %297 : vector<1x1x128xf32> to vector<1x128xf32>
    %299 = vector.shape_cast %293 : vector<1x128xf32> to vector<1x1x128xf32>
    tpu.vector_store %arg4[%c0_146, %c17_147, %c0_148], %299 {strides = array<i32>} : memref<1x20x128xf32, #tpu.memory_space<vmem>>, vector<1x1x128xf32>,
    %c18_i32 = arith.constant 18 : i32
    %300 = vector.broadcast %c18_i32 : i32 to vector<2x128xi32>
    %301 = arith.cmpi eq, %11, %300 : vector<2x128xi32>
    %302 = arith.extui %301 : vector<2x128xi1> to vector<2x128xi32>
    %303 = arith.sitofp %302 : vector<2x128xi32> to vector<2x128xf32>
    %cst_149 = arith.constant dense<0.000000e+00> : vector<128xf32>
    %304 = vector.multi_reduction <add>, %303, %cst_149 [0] : vector<2x128xf32> to vector<128xf32>
    %305 = vector.shape_cast %304 : vector<128xf32> to vector<1x128xf32>
    %cst_150 = arith.constant 0.000000e+00 : f32
    %306 = vector.broadcast %cst_150 : f32 to vector<2x128xf32>
    %307 = arith.select %301, %3, %306 : vector<2x128xi1>, vector<2x128xf32>
    %cst_151 = arith.constant dense<0.000000e+00> : vector<128xf32>
    %308 = vector.multi_reduction <add>, %307, %cst_151 [0] : vector<2x128xf32> to vector<128xf32>
    %309 = vector.shape_cast %308 : vector<128xf32> to vector<1x128xf32>
    %c0_152 = arith.constant 0 : index
    %c18 = arith.constant 18 : index
    %c0_153 = arith.constant 0 : index
    %310 = vector.load %arg3[%c0_152, %c18, %c0_153] : memref<1x20x128xf32, #tpu.memory_space<vmem>>, vector<1x1x128xf32>
    %311 = vector.shape_cast %310 : vector<1x1x128xf32> to vector<1x128xf32>
    %312 = vector.shape_cast %305 : vector<1x128xf32> to vector<1x1x128xf32>
    tpu.vector_store %arg3[%c0_152, %c18, %c0_153], %312 {strides = array<i32>} : memref<1x20x128xf32, #tpu.memory_space<vmem>>, vector<1x1x128xf32>,
    %c0_154 = arith.constant 0 : index
    %c18_155 = arith.constant 18 : index
    %c0_156 = arith.constant 0 : index
    %313 = vector.load %arg4[%c0_154, %c18_155, %c0_156] : memref<1x20x128xf32, #tpu.memory_space<vmem>>, vector<1x1x128xf32>
    %314 = vector.shape_cast %313 : vector<1x1x128xf32> to vector<1x128xf32>
    %315 = vector.shape_cast %309 : vector<1x128xf32> to vector<1x1x128xf32>
    tpu.vector_store %arg4[%c0_154, %c18_155, %c0_156], %315 {strides = array<i32>} : memref<1x20x128xf32, #tpu.memory_space<vmem>>, vector<1x1x128xf32>,
    %c19_i32_157 = arith.constant 19 : i32
    %316 = vector.broadcast %c19_i32_157 : i32 to vector<2x128xi32>
    %317 = arith.cmpi eq, %11, %316 : vector<2x128xi32>
    %318 = arith.extui %317 : vector<2x128xi1> to vector<2x128xi32>
    %319 = arith.sitofp %318 : vector<2x128xi32> to vector<2x128xf32>
    %cst_158 = arith.constant dense<0.000000e+00> : vector<128xf32>
    %320 = vector.multi_reduction <add>, %319, %cst_158 [0] : vector<2x128xf32> to vector<128xf32>
    %321 = vector.shape_cast %320 : vector<128xf32> to vector<1x128xf32>
    %cst_159 = arith.constant 0.000000e+00 : f32
    %322 = vector.broadcast %cst_159 : f32 to vector<2x128xf32>
    %323 = arith.select %317, %3, %322 : vector<2x128xi1>, vector<2x128xf32>
    %cst_160 = arith.constant dense<0.000000e+00> : vector<128xf32>
    %324 = vector.multi_reduction <add>, %323, %cst_160 [0] : vector<2x128xf32> to vector<128xf32>
    %325 = vector.shape_cast %324 : vector<128xf32> to vector<1x128xf32>
    %c0_161 = arith.constant 0 : index
    %c19 = arith.constant 19 : index
    %c0_162 = arith.constant 0 : index
    %326 = vector.load %arg3[%c0_161, %c19, %c0_162] : memref<1x20x128xf32, #tpu.memory_space<vmem>>, vector<1x1x128xf32>
    %327 = vector.shape_cast %326 : vector<1x1x128xf32> to vector<1x128xf32>
    %328 = vector.shape_cast %321 : vector<1x128xf32> to vector<1x1x128xf32>
    tpu.vector_store %arg3[%c0_161, %c19, %c0_162], %328 {strides = array<i32>} : memref<1x20x128xf32, #tpu.memory_space<vmem>>, vector<1x1x128xf32>,
    %c0_163 = arith.constant 0 : index
    %c19_164 = arith.constant 19 : index
    %c0_165 = arith.constant 0 : index
    %329 = vector.load %arg4[%c0_163, %c19_164, %c0_165] : memref<1x20x128xf32, #tpu.memory_space<vmem>>, vector<1x1x128xf32>
    %330 = vector.shape_cast %329 : vector<1x1x128xf32> to vector<1x128xf32>
    %331 = vector.shape_cast %325 : vector<1x128xf32> to vector<1x1x128xf32>
    tpu.vector_store %arg4[%c0_163, %c19_164, %c0_165], %331 {strides = array<i32>} : memref<1x20x128xf32, #tpu.memory_space<vmem>>, vector<1x1x128xf32>,
    return
  }
  func.func @transform_0(%arg0: i32) -> (i32, i32) {
    %c0_i32 = arith.constant 0 : i32
    %c0_i32_0 = arith.constant 0 : i32
    return %arg0, %c0_i32 : i32, i32
  }
  func.func @transform_1(%arg0: i32) -> (i32, i32) {
    %c0_i32 = arith.constant 0 : i32
    %c0_i32_0 = arith.constant 0 : i32
    return %arg0, %c0_i32 : i32, i32
  }
  func.func @transform_2(%arg0: i32) -> (i32, i32, i32) {
    %c0_i32 = arith.constant 0 : i32
    %c0_i32_0 = arith.constant 0 : i32
    %c0_i32_1 = arith.constant 0 : i32
    return %arg0, %c0_i32, %c0_i32_0 : i32, i32, i32
  }
  func.func @transform_3(%arg0: i32) -> (i32, i32, i32) {
    %c0_i32 = arith.constant 0 : i32
    %c0_i32_0 = arith.constant 0 : i32
    %c0_i32_1 = arith.constant 0 : i32
    return %arg0, %c0_i32, %c0_i32_0 : i32, i32, i32
  }
}

</mosaic_0001>

<bundles_post_ra>
// kernel: tpu_custom_call.1
= control target key start
LH: loop header
LB: loop body
LE: loop exit
PB: predicated region body
PF: predicated region fallthrough
CT: control target
= control target key end

     0   :  { %9 = vsyncpa [#allocation3], 0  ;;  %s495_s12 = smov [#allocation2]   ;;  %s796_s0 = inlined_call_operand.hbm [shape: f32[2,128], index: 0, kind: input, shape index: {}]   ;;  %s797_s1 = inlined_call_operand.vmem [shape: f32[2,128], index: 1, kind: input, shape index: {}]   ;;  %s798_s2 = inlined_call_operand.vmem [shape: f32[1,20,128], index: 2, kind: output, shape index: {0}]   ;;  %s799_s3 = inlined_call_operand.vmem [shape: f32[1,20,128], index: 3, kind: output, shape index: {1}]  }
   0x1   :  { %s16_s13 = sshll.u32 %s495_s12, 4  ;;  %s471_s16 = scalar_lea.hbm %s796_s0, 32  ;;  %s17_s13 = int_to_ptr.vmem [resolvable:$true] %s16_s13 }
   0x2   :  { %p472_p0 = scmp.ne.s32.totalorder %s796_s0, %s471_s16  ;;  %p475_p1 = scmp.lt.u32.totalorder %s471_s16, %s796_s0 }
   0x4   :  { %p477_p2 = pnand %p475_p1, %p472_p0 }
   0x6   :  { %480 = shalt.err (!%p477_p2)
}
   0x7   :  { %s481_s21 = scalar_lea.vmem %s17_s13, 32  ;;  %p486_p4 = scmp.lt.s32.totalorder %s17_s13, %s17_s13 }
   0x8   :  { %p482_p3 = scmp.ne.s32.totalorder %s17_s13, %s481_s21  ;;  %p487_p5 = scmp.lt.s32.totalorder %s481_s21, %s481_s21 }
   0xa   :  { %p488_p6 = por %p487_p5, %p486_p4 }
   0xc   :  { %p489_p7 = pnand %p488_p6, %p482_p3 }
   0xe   :  { %492 = shalt.err (!%p489_p7)
}
   0xf   :  { %19 = dma.hbm_to_vmem [thread:$0]  %s796_s0, 32, %s17_s13, [#allocation3]  }
  0x10   :  { %493 = dma.done.wait [#allocation3], 32  }
  0x11   :  { %494 = vsyncadd [#allocation3], 4294967264  ;;  %v26_v0 = vld [vmem:[%s797_s1] sm:$0x3]  ;;  %vm40_vm2 = vcmask 1041408   ;;  %v496_v10 = vmov 0.0  }
  0x12   :  { %v30_v1 = vmul.f32 20.0, %v26_v0  ;;  %v25_v2 = vld [vmem:[#allocation2] sm:$0x3] }
  0x13   :  { %v27_v5 = vsub.f32 %v25_v2, %v26_v0 }
  0x14   :  { %v31_v3 = vfloor.f32 %v30_v1 }
  0x15   :  { %v532_v7 = vmul.f32 %v27_v5, %v27_v5 }
  0x16   :  { %v467_v4 = vtrunc.f32 %v31_v3 }
  0x18   :  { %v468_v6 = vcvt.f32.s32 %v467_v4 }
  0x1a   :  { %vm33_vm0 = vcmp.gt.s32.totalorder %v468_v6, 0 }
  0x1b   :  { %v34_v8 = vsel %vm33_vm0, %v468_v6, 0 }
  0x1c   :  { %vm35_vm1 = vcmp.lt.s32.totalorder %v34_v8, 19 }
  0x1d   :  { %v534_v9 = vsel %vm35_vm1, %v34_v8, 19 }
  0x1e   :  { %vm37_vm3 = vcmp.eq.s32.totalorder %v534_v9, 0  ;;  %vm58_vm4 = vcmp.eq.s32.totalorder %v534_v9, 1  ;;  %vm78_vm5 = vcmp.eq.s32.totalorder %v534_v9, 2  ;;  %vm98_vm6 = vcmp.eq.s32.totalorder %v534_v9, 3 }
  0x1f   :  { %v447_v11 = vsel %vm37_vm3, 1.0, %v496_v10  ;;  %v48_v12 = vsel %vm37_vm3, %v532_v7, 0.0  ;;  %v448_v13 = vsel %vm58_vm4, 1.0, %v496_v10  ;;  %v68_v14 = vsel %vm58_vm4, %v532_v7, 0.0 }
  0x20   :  { %v41_v15 = vsel %vm40_vm2, %v447_v11, 0.0  ;;  %v49_v16 = vsel %vm40_vm2, %v48_v12, 0.0  ;;  %v61_v17 = vsel %vm40_vm2, %v448_v13, 0.0  ;;  %v69_v18 = vsel %vm40_vm2, %v68_v14, 0.0 }
  0x21   :  { %v42_v19 = vrot.slane %v41_v15, 4  ;;  %v50_v20 = vrot.slane %v49_v16, 4  ;;  %v62_v21 = vrot.slane %v61_v17, 4  ;;  %v70_v22 = vrot.slane %v69_v18, 4 }
  0x22   :  { %v449_v23 = vsel %vm78_vm5, 1.0, %v496_v10  ;;  %v88_v24 = vsel %vm78_vm5, %v532_v7, 0.0  ;;  %v450_v25 = vsel %vm98_vm6, 1.0, %v496_v10  ;;  %v108_v26 = vsel %vm98_vm6, %v532_v7, 0.0 }
  0x23   :  { %v43_v27 = vadd.f32 %v42_v19, %v41_v15  ;;  %v51_v28 = vadd.f32 %v50_v20, %v49_v16  ;;  %v63_v29 = vadd.f32 %v62_v21, %v61_v17  ;;  %v71_v30 = vadd.f32 %v70_v22, %v69_v18 }
  0x24   :  { %v81_v31 = vsel %vm40_vm2, %v449_v23, 0.0  ;;  %v89_v32 = vsel %vm40_vm2, %v88_v24, 0.0  ;;  %v101_v33 = vsel %vm40_vm2, %v450_v25, 0.0  ;;  %v109_v34 = vsel %vm40_vm2, %v108_v26, 0.0 }
  0x25   :  { %v44_v35 = vrot.slane %v43_v27, 2  ;;  %v52_v36 = vrot.slane %v51_v28, 2  ;;  %v64_v37 = vrot.slane %v63_v29, 2  ;;  %v72_v38 = vrot.slane %v71_v30, 2 }
  0x26   :  { %v82_v39 = vrot.slane %v81_v31, 4  ;;  %v90_v40 = vrot.slane %v89_v32, 4  ;;  %v102_v41 = vrot.slane %v101_v33, 4  ;;  %v110_v42 = vrot.slane %v109_v34, 4 }
  0x27   :  { %v45_v43 = vadd.f32 %v44_v35, %v43_v27  ;;  %v53_v44 = vadd.f32 %v52_v36, %v51_v28  ;;  %v65_v45 = vadd.f32 %v64_v37, %v63_v29  ;;  %v73_v46 = vadd.f32 %v72_v38, %v71_v30 }
  0x28   :  { %v83_v47 = vadd.f32 %v82_v39, %v81_v31  ;;  %v91_v48 = vadd.f32 %v90_v40, %v89_v32  ;;  %v103_v49 = vadd.f32 %v102_v41, %v101_v33  ;;  %v111_v50 = vadd.f32 %v110_v42, %v109_v34 }
  0x29   :  { %v46_v51 = vrot.slane %v45_v43, 1  ;;  %v54_v52 = vrot.slane %v53_v44, 1  ;;  %v66_v53 = vrot.slane %v65_v45, 1  ;;  %v74_v54 = vrot.slane %v73_v46, 1 }
  0x2a   :  { %v84_v55 = vrot.slane %v83_v47, 2  ;;  %v92_v56 = vrot.slane %v91_v48, 2  ;;  %v104_v57 = vrot.slane %v103_v49, 2  ;;  %v112_v58 = vrot.slane %v111_v50, 2 }
  0x2b   :  { %v47_v59 = vadd.f32 %v46_v51, %v45_v43  ;;  %v55_v60 = vadd.f32 %v54_v52, %v53_v44  ;;  %v67_v61 = vadd.f32 %v66_v53, %v65_v45  ;;  %v75_v62 = vadd.f32 %v74_v54, %v73_v46 }
  0x2c   :  { %v85_v63 = vadd.f32 %v84_v55, %v83_v47  ;;  %v93_v0 = vadd.f32 %v92_v56, %v91_v48  ;;  %v105_v1 = vadd.f32 %v104_v57, %v103_v49  ;;  %v113_v2 = vadd.f32 %v112_v58, %v111_v50 }
  0x2d   :  { %56 = vst [vmem:[%s798_s2] sm:$0x1] %v47_v59  ;;  %57 = vst [vmem:[%s799_s3] sm:$0x1] %v55_v60  ;;  %vm118_vm7 = vcmp.eq.s32.totalorder %v534_v9, 4  ;;  %vm138_vm8 = vcmp.eq.s32.totalorder %v534_v9, 5  ;;  %vm158_vm9 = vcmp.eq.s32.totalorder %v534_v9, 6  ;;  %vm178_vm10 = vcmp.eq.s32.totalorder %v534_v9, 7 }
  0x2e   :  { %76 = vst [vmem:[%s798_s2 + $0x1] sm:$0x1] %v67_v61  ;;  %77 = vst [vmem:[%s799_s3 + $0x1] sm:$0x1] %v75_v62  ;;  %v86_v3 = vrot.slane %v85_v63, 1  ;;  %v94_v4 = vrot.slane %v93_v0, 1 }
  0x2f   :  { %v106_v5 = vrot.slane %v105_v1, 1  ;;  %v114_v6 = vrot.slane %v113_v2, 1  ;;  %v451_v8 = vsel %vm118_vm7, 1.0, %v496_v10  ;;  %v128_v11 = vsel %vm118_vm7, %v532_v7, 0.0 }
  0x30   :  { %v452_v12 = vsel %vm138_vm8, 1.0, %v496_v10  ;;  %v148_v13 = vsel %vm138_vm8, %v532_v7, 0.0  ;;  %v87_v14 = vadd.f32 %v86_v3, %v85_v63  ;;  %v95_v15 = vadd.f32 %v94_v4, %v93_v0 }
  0x31   :  { %v107_v16 = vadd.f32 %v106_v5, %v105_v1  ;;  %v115_v17 = vadd.f32 %v114_v6, %v113_v2  ;;  %v121_v18 = vsel %vm40_vm2, %v451_v8, 0.0  ;;  %v129_v19 = vsel %vm40_vm2, %v128_v11, 0.0 }
  0x32   :  { %v141_v20 = vsel %vm40_vm2, %v452_v12, 0.0  ;;  %v149_v21 = vsel %vm40_vm2, %v148_v13, 0.0  ;;  %96 = vst [vmem:[%s798_s2 + $0x2] sm:$0x1] %v87_v14  ;;  %97 = vst [vmem:[%s799_s3 + $0x2] sm:$0x1] %v95_v15 }
  0x33   :  { %116 = vst [vmem:[%s798_s2 + $0x3] sm:$0x1] %v107_v16  ;;  %117 = vst [vmem:[%s799_s3 + $0x3] sm:$0x1] %v115_v17  ;;  %v122_v22 = vrot.slane %v121_v18, 4  ;;  %v130_v23 = vrot.slane %v129_v19, 4 }
  0x34   :  { %v142_v24 = vrot.slane %v141_v20, 4  ;;  %v150_v25 = vrot.slane %v149_v21, 4  ;;  %v453_v26 = vsel %vm158_vm9, 1.0, %v496_v10  ;;  %v168_v27 = vsel %vm158_vm9, %v532_v7, 0.0 }
  0x35   :  { %v454_v28 = vsel %vm178_vm10, 1.0, %v496_v10  ;;  %v188_v29 = vsel %vm178_vm10, %v532_v7, 0.0  ;;  %v123_v30 = vadd.f32 %v122_v22, %v121_v18  ;;  %v131_v31 = vadd.f32 %v130_v23, %v129_v19 }
  0x36   :  { %v143_v32 = vadd.f32 %v142_v24, %v141_v20  ;;  %v151_v33 = vadd.f32 %v150_v25, %v149_v21  ;;  %v161_v34 = vsel %vm40_vm2, %v453_v26, 0.0  ;;  %v169_v35 = vsel %vm40_vm2, %v168_v27, 0.0 }
  0x37   :  { %v181_v36 = vsel %vm40_vm2, %v454_v28, 0.0  ;;  %v189_v37 = vsel %vm40_vm2, %v188_v29, 0.0  ;;  %v124_v38 = vrot.slane %v123_v30, 2  ;;  %v132_v39 = vrot.slane %v131_v31, 2 }
  0x38   :  { %v144_v40 = vrot.slane %v143_v32, 2  ;;  %v152_v41 = vrot.slane %v151_v33, 2  ;;  %v162_v42 = vrot.slane %v161_v34, 4  ;;  %v170_v43 = vrot.slane %v169_v35, 4 }
  0x39   :  { %v182_v44 = vrot.slane %v181_v36, 4  ;;  %v190_v45 = vrot.slane %v189_v37, 4  ;;  %v125_v46 = vadd.f32 %v124_v38, %v123_v30  ;;  %v133_v47 = vadd.f32 %v132_v39, %v131_v31 }
  0x3a   :  { %v145_v48 = vadd.f32 %v144_v40, %v143_v32  ;;  %v153_v49 = vadd.f32 %v152_v41, %v151_v33  ;;  %v163_v50 = vadd.f32 %v162_v42, %v161_v34  ;;  %v171_v51 = vadd.f32 %v170_v43, %v169_v35 }
  0x3b   :  { %v183_v52 = vadd.f32 %v182_v44, %v181_v36  ;;  %v191_v53 = vadd.f32 %v190_v45, %v189_v37  ;;  %v126_v54 = vrot.slane %v125_v46, 1  ;;  %v134_v55 = vrot.slane %v133_v47, 1 }
  0x3c   :  { %v146_v56 = vrot.slane %v145_v48, 1  ;;  %v154_v57 = vrot.slane %v153_v49, 1  ;;  %v164_v58 = vrot.slane %v163_v50, 2  ;;  %v172_v59 = vrot.slane %v171_v51, 2 }
  0x3d   :  { %v184_v60 = vrot.slane %v183_v52, 2  ;;  %v192_v61 = vrot.slane %v191_v53, 2  ;;  %v127_v62 = vadd.f32 %v126_v54, %v125_v46  ;;  %v135_v63 = vadd.f32 %v134_v55, %v133_v47 }
  0x3e   :  { %v147_v0 = vadd.f32 %v146_v56, %v145_v48  ;;  %v155_v1 = vadd.f32 %v154_v57, %v153_v49  ;;  %v165_v2 = vadd.f32 %v164_v58, %v163_v50  ;;  %v173_v3 = vadd.f32 %v172_v59, %v171_v51 }
  0x3f   :  { %v185_v4 = vadd.f32 %v184_v60, %v183_v52  ;;  %v193_v5 = vadd.f32 %v192_v61, %v191_v53  ;;  %136 = vst [vmem:[%s798_s2 + $0x4] sm:$0x1] %v127_v62  ;;  %137 = vst [vmem:[%s799_s3 + $0x4] sm:$0x1] %v135_v63  ;;  %vm198_vm11 = vcmp.eq.s32.totalorder %v534_v9, 8  ;;  %vm218_vm12 = vcmp.eq.s32.totalorder %v534_v9, 9 }
  0x40   :  { %156 = vst [vmem:[%s798_s2 + $0x5] sm:$0x1] %v147_v0  ;;  %157 = vst [vmem:[%s799_s3 + $0x5] sm:$0x1] %v155_v1  ;;  %vm238_vm13 = vcmp.eq.s32.totalorder %v534_v9, 10  ;;  %vm258_vm14 = vcmp.eq.s32.totalorder %v534_v9, 11 }
  0x41   :  { %v166_v6 = vrot.slane %v165_v2, 1  ;;  %v174_v8 = vrot.slane %v173_v3, 1  ;;  %v186_v11 = vrot.slane %v185_v4, 1  ;;  %v194_v12 = vrot.slane %v193_v5, 1 }
  0x42   :  { %v455_v13 = vsel %vm198_vm11, 1.0, %v496_v10  ;;  %v208_v14 = vsel %vm198_vm11, %v532_v7, 0.0  ;;  %v456_v15 = vsel %vm218_vm12, 1.0, %v496_v10  ;;  %v228_v16 = vsel %vm218_vm12, %v532_v7, 0.0 }
  0x43   :  { %v167_v17 = vadd.f32 %v166_v6, %v165_v2  ;;  %v175_v18 = vadd.f32 %v174_v8, %v173_v3  ;;  %v187_v19 = vadd.f32 %v186_v11, %v185_v4  ;;  %v195_v20 = vadd.f32 %v194_v12, %v193_v5 }
  0x44   :  { %v201_v21 = vsel %vm40_vm2, %v455_v13, 0.0  ;;  %v209_v22 = vsel %vm40_vm2, %v208_v14, 0.0  ;;  %v221_v23 = vsel %vm40_vm2, %v456_v15, 0.0  ;;  %v229_v24 = vsel %vm40_vm2, %v228_v16, 0.0 }
  0x45   :  { %176 = vst [vmem:[%s798_s2 + $0x6] sm:$0x1] %v167_v17  ;;  %177 = vst [vmem:[%s799_s3 + $0x6] sm:$0x1] %v175_v18  ;;  %v202_v25 = vrot.slane %v201_v21, 4  ;;  %v210_v26 = vrot.slane %v209_v22, 4 }
  0x46   :  { %196 = vst [vmem:[%s798_s2 + $0x7] sm:$0x1] %v187_v19  ;;  %197 = vst [vmem:[%s799_s3 + $0x7] sm:$0x1] %v195_v20  ;;  %v222_v27 = vrot.slane %v221_v23, 4  ;;  %v230_v28 = vrot.slane %v229_v24, 4 }
  0x47   :  { %v457_v29 = vsel %vm238_vm13, 1.0, %v496_v10  ;;  %v248_v30 = vsel %vm238_vm13, %v532_v7, 0.0  ;;  %v458_v31 = vsel %vm258_vm14, 1.0, %v496_v10  ;;  %v268_v32 = vsel %vm258_vm14, %v532_v7, 0.0 }
  0x48   :  { %v203_v33 = vadd.f32 %v202_v25, %v201_v21  ;;  %v211_v34 = vadd.f32 %v210_v26, %v209_v22  ;;  %v223_v35 = vadd.f32 %v222_v27, %v221_v23  ;;  %v231_v36 = vadd.f32 %v230_v28, %v229_v24 }
  0x49   :  { %v241_v37 = vsel %vm40_vm2, %v457_v29, 0.0  ;;  %v249_v38 = vsel %vm40_vm2, %v248_v30, 0.0  ;;  %v261_v39 = vsel %vm40_vm2, %v458_v31, 0.0  ;;  %v269_v40 = vsel %vm40_vm2, %v268_v32, 0.0 }
  0x4a   :  { %v204_v41 = vrot.slane %v203_v33, 2  ;;  %v212_v42 = vrot.slane %v211_v34, 2  ;;  %v224_v43 = vrot.slane %v223_v35, 2  ;;  %v232_v44 = vrot.slane %v231_v36, 2 }
  0x4b   :  { %v242_v45 = vrot.slane %v241_v37, 4  ;;  %v250_v46 = vrot.slane %v249_v38, 4  ;;  %v262_v47 = vrot.slane %v261_v39, 4  ;;  %v270_v48 = vrot.slane %v269_v40, 4 }
  0x4c   :  { %v205_v49 = vadd.f32 %v204_v41, %v203_v33  ;;  %v213_v50 = vadd.f32 %v212_v42, %v211_v34  ;;  %v225_v51 = vadd.f32 %v224_v43, %v223_v35  ;;  %v233_v52 = vadd.f32 %v232_v44, %v231_v36 }
  0x4d   :  { %v243_v53 = vadd.f32 %v242_v45, %v241_v37  ;;  %v251_v54 = vadd.f32 %v250_v46, %v249_v38  ;;  %v263_v55 = vadd.f32 %v262_v47, %v261_v39  ;;  %v271_v56 = vadd.f32 %v270_v48, %v269_v40 }
  0x4e   :  { %v206_v57 = vrot.slane %v205_v49, 1  ;;  %v214_v58 = vrot.slane %v213_v50, 1  ;;  %v226_v59 = vrot.slane %v225_v51, 1  ;;  %v234_v60 = vrot.slane %v233_v52, 1 }
  0x4f   :  { %v244_v61 = vrot.slane %v243_v53, 2  ;;  %v252_v62 = vrot.slane %v251_v54, 2  ;;  %v264_v63 = vrot.slane %v263_v55, 2  ;;  %v272_v0 = vrot.slane %v271_v56, 2 }
  0x50   :  { %v207_v1 = vadd.f32 %v206_v57, %v205_v49  ;;  %v215_v2 = vadd.f32 %v214_v58, %v213_v50  ;;  %v227_v3 = vadd.f32 %v226_v59, %v225_v51  ;;  %v235_v4 = vadd.f32 %v234_v60, %v233_v52 }
  0x51   :  { %v245_v5 = vadd.f32 %v244_v61, %v243_v53  ;;  %v253_v6 = vadd.f32 %v252_v62, %v251_v54  ;;  %v265_v8 = vadd.f32 %v264_v63, %v263_v55  ;;  %v273_v11 = vadd.f32 %v272_v0, %v271_v56 }
  0x52   :  { %216 = vst [vmem:[%s798_s2 + $0x8] sm:$0x1] %v207_v1  ;;  %217 = vst [vmem:[%s799_s3 + $0x8] sm:$0x1] %v215_v2  ;;  %vm278_vm15 = vcmp.eq.s32.totalorder %v534_v9, 12  ;;  %vm298_vm0 = vcmp.eq.s32.totalorder %v534_v9, 13 }
  0x53   :  { %236 = vst [vmem:[%s798_s2 + $0x9] sm:$0x1] %v227_v3  ;;  %237 = vst [vmem:[%s799_s3 + $0x9] sm:$0x1] %v235_v4  ;;  %vm318_vm1 = vcmp.eq.s32.totalorder %v534_v9, 14  ;;  %vm338_vm3 = vcmp.eq.s32.totalorder %v534_v9, 15 }
  0x54   :  { %v246_v12 = vrot.slane %v245_v5, 1  ;;  %v254_v13 = vrot.slane %v253_v6, 1  ;;  %v266_v14 = vrot.slane %v265_v8, 1  ;;  %v274_v15 = vrot.slane %v273_v11, 1 }
  0x55   :  { %v459_v16 = vsel %vm278_vm15, 1.0, %v496_v10  ;;  %v288_v17 = vsel %vm278_vm15, %v532_v7, 0.0  ;;  %v460_v18 = vsel %vm298_vm0, 1.0, %v496_v10  ;;  %v308_v19 = vsel %vm298_vm0, %v532_v7, 0.0 }
  0x56   :  { %v247_v20 = vadd.f32 %v246_v12, %v245_v5  ;;  %v255_v21 = vadd.f32 %v254_v13, %v253_v6  ;;  %v267_v22 = vadd.f32 %v266_v14, %v265_v8  ;;  %v275_v23 = vadd.f32 %v274_v15, %v273_v11 }
  0x57   :  { %v281_v24 = vsel %vm40_vm2, %v459_v16, 0.0  ;;  %v289_v25 = vsel %vm40_vm2, %v288_v17, 0.0  ;;  %v301_v26 = vsel %vm40_vm2, %v460_v18, 0.0  ;;  %v309_v27 = vsel %vm40_vm2, %v308_v19, 0.0 }
  0x58   :  { %256 = vst [vmem:[%s798_s2 + $0xa] sm:$0x1] %v247_v20  ;;  %257 = vst [vmem:[%s799_s3 + $0xa] sm:$0x1] %v255_v21  ;;  %v282_v28 = vrot.slane %v281_v24, 4  ;;  %v290_v29 = vrot.slane %v289_v25, 4 }
  0x59   :  { %276 = vst [vmem:[%s798_s2 + $0xb] sm:$0x1] %v267_v22  ;;  %277 = vst [vmem:[%s799_s3 + $0xb] sm:$0x1] %v275_v23  ;;  %v302_v30 = vrot.slane %v301_v26, 4  ;;  %v310_v31 = vrot.slane %v309_v27, 4 }
  0x5a   :  { %v461_v32 = vsel %vm318_vm1, 1.0, %v496_v10  ;;  %v328_v33 = vsel %vm318_vm1, %v532_v7, 0.0  ;;  %v462_v34 = vsel %vm338_vm3, 1.0, %v496_v10  ;;  %v348_v35 = vsel %vm338_vm3, %v532_v7, 0.0 }
  0x5b   :  { %v283_v36 = vadd.f32 %v282_v28, %v281_v24  ;;  %v291_v37 = vadd.f32 %v290_v29, %v289_v25  ;;  %v303_v38 = vadd.f32 %v302_v30, %v301_v26  ;;  %v311_v39 = vadd.f32 %v310_v31, %v309_v27 }
  0x5c   :  { %v321_v40 = vsel %vm40_vm2, %v461_v32, 0.0  ;;  %v329_v41 = vsel %vm40_vm2, %v328_v33, 0.0  ;;  %v341_v42 = vsel %vm40_vm2, %v462_v34, 0.0  ;;  %v349_v43 = vsel %vm40_vm2, %v348_v35, 0.0 }
  0x5d   :  { %v284_v44 = vrot.slane %v283_v36, 2  ;;  %v292_v45 = vrot.slane %v291_v37, 2  ;;  %v304_v46 = vrot.slane %v303_v38, 2  ;;  %v312_v47 = vrot.slane %v311_v39, 2 }
  0x5e   :  { %v322_v48 = vrot.slane %v321_v40, 4  ;;  %v330_v49 = vrot.slane %v329_v41, 4  ;;  %v342_v50 = vrot.slane %v341_v42, 4  ;;  %v350_v51 = vrot.slane %v349_v43, 4 }
  0x5f   :  { %v285_v52 = vadd.f32 %v284_v44, %v283_v36  ;;  %v293_v53 = vadd.f32 %v292_v45, %v291_v37  ;;  %v305_v54 = vadd.f32 %v304_v46, %v303_v38  ;;  %v313_v55 = vadd.f32 %v312_v47, %v311_v39 }
  0x60   :  { %v323_v56 = vadd.f32 %v322_v48, %v321_v40  ;;  %v331_v57 = vadd.f32 %v330_v49, %v329_v41  ;;  %v343_v58 = vadd.f32 %v342_v50, %v341_v42  ;;  %v351_v59 = vadd.f32 %v350_v51, %v349_v43 }
  0x61   :  { %v286_v60 = vrot.slane %v285_v52, 1  ;;  %v294_v61 = vrot.slane %v293_v53, 1  ;;  %v306_v62 = vrot.slane %v305_v54, 1  ;;  %v314_v63 = vrot.slane %v313_v55, 1 }
  0x62   :  { %v324_v0 = vrot.slane %v323_v56, 2  ;;  %v332_v1 = vrot.slane %v331_v57, 2  ;;  %v344_v2 = vrot.slane %v343_v58, 2  ;;  %v352_v3 = vrot.slane %v351_v59, 2 }
  0x63   :  { %v287_v4 = vadd.f32 %v286_v60, %v285_v52  ;;  %v295_v5 = vadd.f32 %v294_v61, %v293_v53  ;;  %v307_v6 = vadd.f32 %v306_v62, %v305_v54  ;;  %v315_v8 = vadd.f32 %v314_v63, %v313_v55 }
  0x64   :  { %v325_v11 = vadd.f32 %v324_v0, %v323_v56  ;;  %v333_v12 = vadd.f32 %v332_v1, %v331_v57  ;;  %v345_v13 = vadd.f32 %v344_v2, %v343_v58  ;;  %v353_v14 = vadd.f32 %v352_v3, %v351_v59 }
  0x65   :  { %296 = vst [vmem:[%s798_s2 + $0xc] sm:$0x1] %v287_v4  ;;  %297 = vst [vmem:[%s799_s3 + $0xc] sm:$0x1] %v295_v5  ;;  %vm358_vm4 = vcmp.eq.s32.totalorder %v534_v9, 16  ;;  %vm378_vm5 = vcmp.eq.s32.totalorder %v534_v9, 17 }
  0x66   :  { %316 = vst [vmem:[%s798_s2 + $0xd] sm:$0x1] %v307_v6  ;;  %317 = vst [vmem:[%s799_s3 + $0xd] sm:$0x1] %v315_v8  ;;  %vm398_vm6 = vcmp.eq.s32.totalorder %v534_v9, 18  ;;  %vm418_vm7 = vcmp.eq.s32.totalorder %v534_v9, 19 }
  0x67   :  { %v326_v15 = vrot.slane %v325_v11, 1  ;;  %v334_v16 = vrot.slane %v333_v12, 1  ;;  %v346_v17 = vrot.slane %v345_v13, 1  ;;  %v354_v18 = vrot.slane %v353_v14, 1 }
  0x68   :  { %v463_v19 = vsel %vm358_vm4, 1.0, %v496_v10  ;;  %v368_v20 = vsel %vm358_vm4, %v532_v7, 0.0  ;;  %v464_v21 = vsel %vm378_vm5, 1.0, %v496_v10  ;;  %v388_v22 = vsel %vm378_vm5, %v532_v7, 0.0 }
  0x69   :  { %v327_v23 = vadd.f32 %v326_v15, %v325_v11  ;;  %v335_v24 = vadd.f32 %v334_v16, %v333_v12  ;;  %v347_v25 = vadd.f32 %v346_v17, %v345_v13  ;;  %v355_v26 = vadd.f32 %v354_v18, %v353_v14 }
  0x6a   :  { %v361_v27 = vsel %vm40_vm2, %v463_v19, 0.0  ;;  %v369_v28 = vsel %vm40_vm2, %v368_v20, 0.0  ;;  %v381_v29 = vsel %vm40_vm2, %v464_v21, 0.0  ;;  %v389_v30 = vsel %vm40_vm2, %v388_v22, 0.0 }
  0x6b   :  { %336 = vst [vmem:[%s798_s2 + $0xe] sm:$0x1] %v327_v23  ;;  %337 = vst [vmem:[%s799_s3 + $0xe] sm:$0x1] %v335_v24  ;;  %v362_v31 = vrot.slane %v361_v27, 4  ;;  %v370_v32 = vrot.slane %v369_v28, 4 }
  0x6c   :  { %356 = vst [vmem:[%s798_s2 + $0xf] sm:$0x1] %v347_v25  ;;  %357 = vst [vmem:[%s799_s3 + $0xf] sm:$0x1] %v355_v26  ;;  %v382_v33 = vrot.slane %v381_v29, 4  ;;  %v390_v34 = vrot.slane %v389_v30, 4 }
  0x6d   :  { %v465_v35 = vsel %vm398_vm6, 1.0, %v496_v10  ;;  %v408_v36 = vsel %vm398_vm6, %v532_v7, 0.0  ;;  %v466_v37 = vsel %vm418_vm7, 1.0, %v496_v10  ;;  %v428_v38 = vsel %vm418_vm7, %v532_v7, 0.0 }
  0x6e   :  { %v363_v39 = vadd.f32 %v362_v31, %v361_v27  ;;  %v371_v40 = vadd.f32 %v370_v32, %v369_v28  ;;  %v383_v41 = vadd.f32 %v382_v33, %v381_v29  ;;  %v391_v42 = vadd.f32 %v390_v34, %v389_v30 }
  0x6f   :  { %v401_v43 = vsel %vm40_vm2, %v465_v35, 0.0  ;;  %v409_v44 = vsel %vm40_vm2, %v408_v36, 0.0  ;;  %v421_v45 = vsel %vm40_vm2, %v466_v37, 0.0  ;;  %v429_v46 = vsel %vm40_vm2, %v428_v38, 0.0 }
  0x70   :  { %v364_v47 = vrot.slane %v363_v39, 2  ;;  %v372_v48 = vrot.slane %v371_v40, 2  ;;  %v384_v49 = vrot.slane %v383_v41, 2  ;;  %v392_v10 = vrot.slane %v391_v42, 2 }
  0x71   :  { %v402_v50 = vrot.slane %v401_v43, 4  ;;  %v410_v51 = vrot.slane %v409_v44, 4  ;;  %v422_v9 = vrot.slane %v421_v45, 4  ;;  %v430_v7 = vrot.slane %v429_v46, 4 }
  0x72   :  { %v365_v52 = vadd.f32 %v364_v47, %v363_v39  ;;  %v373_v53 = vadd.f32 %v372_v48, %v371_v40  ;;  %v385_v54 = vadd.f32 %v384_v49, %v383_v41  ;;  %v393_v55 = vadd.f32 %v392_v10, %v391_v42 }
  0x73   :  { %v403_v56 = vadd.f32 %v402_v50, %v401_v43  ;;  %v411_v57 = vadd.f32 %v410_v51, %v409_v44  ;;  %v423_v58 = vadd.f32 %v422_v9, %v421_v45  ;;  %v431_v59 = vadd.f32 %v430_v7, %v429_v46 }
  0x74   :  { %v366_v60 = vrot.slane %v365_v52, 1  ;;  %v374_v61 = vrot.slane %v373_v53, 1  ;;  %v386_v62 = vrot.slane %v385_v54, 1  ;;  %v394_v63 = vrot.slane %v393_v55, 1 }
  0x75   :  { %v404_v0 = vrot.slane %v403_v56, 2  ;;  %v412_v1 = vrot.slane %v411_v57, 2  ;;  %v424_v2 = vrot.slane %v423_v58, 2  ;;  %v432_v3 = vrot.slane %v431_v59, 2 }
  0x76   :  { %v367_v4 = vadd.f32 %v366_v60, %v365_v52  ;;  %v375_v5 = vadd.f32 %v374_v61, %v373_v53  ;;  %v387_v6 = vadd.f32 %v386_v62, %v385_v54  ;;  %v395_v8 = vadd.f32 %v394_v63, %v393_v55 }
  0x77   :  { %v405_v11 = vadd.f32 %v404_v0, %v403_v56  ;;  %v413_v12 = vadd.f32 %v412_v1, %v411_v57  ;;  %v425_v13 = vadd.f32 %v424_v2, %v423_v58  ;;  %v433_v14 = vadd.f32 %v432_v3, %v431_v59 }
  0x78   :  { %376 = vst [vmem:[%s798_s2 + $0x10] sm:$0x1] %v367_v4  ;;  %377 = vst [vmem:[%s799_s3 + $0x10] sm:$0x1] %v375_v5 }
  0x79   :  { %396 = vst [vmem:[%s798_s2 + $0x11] sm:$0x1] %v387_v6  ;;  %397 = vst [vmem:[%s799_s3 + $0x11] sm:$0x1] %v395_v8  ;;  %v406_v15 = vrot.slane %v405_v11, 1  ;;  %v414_v16 = vrot.slane %v413_v12, 1 }
  0x7a   :  { %v426_v17 = vrot.slane %v425_v13, 1  ;;  %v434_v18 = vrot.slane %v433_v14, 1 }
  0x7b   :  { %v407_v19 = vadd.f32 %v406_v15, %v405_v11  ;;  %v415_v20 = vadd.f32 %v414_v16, %v413_v12 }
  0x7c   :  { %v427_v21 = vadd.f32 %v426_v17, %v425_v13  ;;  %v435_v22 = vadd.f32 %v434_v18, %v433_v14 }
  0x7d   :  { %416 = vst [vmem:[%s798_s2 + $0x12] sm:$0x1] %v407_v19  ;;  %417 = vst [vmem:[%s799_s3 + $0x12] sm:$0x1] %v415_v20 }
  0x7e   :  { %436 = vst [vmem:[%s798_s2 + $0x13] sm:$0x1] %v427_v21  ;;  %437 = vst [vmem:[%s799_s3 + $0x13] sm:$0x1] %v435_v22 }
  0x7f   :  { %446 = vsyncpa [#allocation3], 1 }

</bundles_post_ra>
